<compile_context>
chip_gen: v6e
topology: v6e:2x2x1
jax: 0.10.0
libtpu: 0.0.40
codegen_flags: <defaults>
</compile_context>

<pallas_src>
import functools

import numpy as np
import jax
import jax.numpy as jnp
from jax.experimental import pallas as pl
from jax.experimental.pallas import tpu as pltpu


_BINOMIAL = {
    1: np.array([1.0]),
    2: np.array([1.0, 1.0]),
    3: np.array([1.0, 2.0, 1.0]),
    4: np.array([1.0, 3.0, 3.0, 1.0]),
    5: np.array([1.0, 4.0, 6.0, 4.0, 1.0]),
    6: np.array([1.0, 5.0, 10.0, 10.0, 5.0, 1.0]),
    7: np.array([1.0, 6.0, 15.0, 20.0, 15.0, 6.0, 1.0]),
}


def _downsample_matrix(n, filt_size, stride, pad_l, pad_r, pad_type):
    """(n_out, n) operator = strided 1-D binomial filter @ padding operator."""
    a = _BINOMIAL[filt_size]
    a = a / a.sum()                       # outer(a,a)/sum(outer) = a_n (x) a_n
    n_pad = n + pad_l + pad_r
    P = np.zeros((n_pad, n), np.float64)  # padding operator
    for q in range(n_pad):
        i = q - pad_l
        if 0 <= i < n:
            P[q, i] = 1.0
        elif pad_type in ("refl", "reflect"):
            r = -i if i < 0 else 2 * (n - 1) - i
            P[q, r] = 1.0
        elif pad_type in ("repl", "replicate"):
            P[q, min(max(i, 0), n - 1)] = 1.0
        elif pad_type == "zero":
            pass
        else:
            raise ValueError(f"Pad type [{pad_type}] not recognized")
    n_out = (n_pad - filt_size) // stride + 1
    Cm = np.zeros((n_out, n_pad), np.float64)
    for o in range(n_out):
        Cm[o, o * stride: o * stride + filt_size] = a
    return (Cm @ P).astype(np.float32)    # (n_out, n)


def _blurpool_kernel(x_ref, dht_ref, dv_ref, o_ref):
    """Per-block blur+downsample: y[b] = Dv @ x[b] @ Dh^T (two MXU matmuls)."""
    TB, H, W = x_ref.shape
    _, Ho, Wo = o_ref.shape
    x = x_ref[...].astype(jnp.float32)
    # Horizontal blur + stride: contract the lane dim (W) on the MXU.
    t = jnp.dot(x.reshape(TB * H, W), dht_ref[...],
                preferred_element_type=jnp.float32).reshape(TB, H, Wo)
    # Vertical blur + stride: batched (Ho,H) @ (H,Wo) per plane on the MXU.
    dv = jnp.broadcast_to(dv_ref[...], (TB, Ho, H))
    y = jnp.einsum("bih,bhj->bij", dv, t, preferred_element_type=jnp.float32)
    o_ref[...] = y.astype(o_ref.dtype)


def _pick_block_planes(num_planes, in_plane_bytes, out_plane_bytes,
                       budget_bytes=4 << 20):
    """Largest divisor of num_planes whose block fits the VMEM budget."""
    best = 1
    for tb in range(1, num_planes + 1):
        if num_planes % tb == 0 and tb * (in_plane_bytes + out_plane_bytes) <= budget_bytes:
            best = tb
    if best == num_planes and num_planes > 1:
        # Keep >= 2 grid steps so the DMA pipeline overlaps and v7x's two
        # TensorCores can each take grid steps.
        for tb in range(num_planes // 2, 0, -1):
            if num_planes % tb == 0:
                return tb
    return best


@functools.partial(jax.jit,
                   static_argnames=("filt_size", "stride", "pad_type", "pad_off"))
def downsample_forward(x, *, filt_size=3, stride=2, pad_type="reflect", pad_off=0):
    """Forward pass of gluoncv Downsample. x: (N, C, H, W) -> (N, C, Ho, Wo)."""
    N, C, H, W = x.shape
    pad_l = int(1.0 * (filt_size - 1) / 2) + pad_off
    pad_r = int(np.ceil(1.0 * (filt_size - 1) / 2)) + pad_off

    # Padding + strided binomial filter folded into tiny constant operators
    # (covers the filt_size==1 slicing shortcut as a selection matrix too).
    dv = _downsample_matrix(H, filt_size, stride, pad_l, pad_r, pad_type)  # (Ho, H)
    dh = _downsample_matrix(W, filt_size, stride, pad_l, pad_r, pad_type)  # (Wo, W)
    Ho, Wo = dv.shape[0], dh.shape[0]

    B = N * C                                   # depthwise -> independent planes
    xb = x.reshape(B, H, W)                     # free reshape, no transpose

    itemsize = x.dtype.itemsize
    in_plane_bytes = H * W * itemsize
    out_plane_bytes = Ho * Wo * itemsize
    tb = _pick_block_planes(B, in_plane_bytes, out_plane_bytes)
    grid = (B // tb,)
    # TODO(synk): add an H-row grid axis (output-row bands of Dv) for planes
    # larger than the per-block VMEM budget.

    dht = jnp.asarray(dh.T, jnp.float32)        # (W, Wo)
    dvj = jnp.asarray(dv, jnp.float32)          # (Ho, H)

    block_bytes = tb * (in_plane_bytes + out_plane_bytes)
    const_bytes = 4 * (dht.size + dvj.size)
    vmem_limit = int(max(2 * block_bytes + 2 * const_bytes + (4 << 20), 16 << 20))

    flops = 2.0 * B * H * Wo * (W + Ho)
    bytes_accessed = B * (in_plane_bytes + out_plane_bytes) + grid[0] * const_bytes

    out = pl.pallas_call(
        _blurpool_kernel,
        out_shape=jax.ShapeDtypeStruct((B, Ho, Wo), x.dtype),
        grid=grid,
        in_specs=[
            pl.BlockSpec((tb, H, W), lambda b: (b, 0, 0)),
            pl.BlockSpec((W, Wo), lambda b: (0, 0)),
            pl.BlockSpec((Ho, H), lambda b: (0, 0)),
        ],
        out_specs=pl.BlockSpec((tb, Ho, Wo), lambda b: (b, 0, 0)),
        compiler_params=pltpu.CompilerParams(
            dimension_semantics=("parallel",),
            vmem_limit_bytes=vmem_limit,
        ),
        cost_estimate=pl.CostEstimate(
            flops=int(flops), transcendentals=0, bytes_accessed=int(bytes_accessed)),
    )(xb, dht, dvj)

    return out.reshape(N, C, Ho, Wo)


def _reference_forward(x, *, filt_size=3, stride=2, pad_type="reflect", pad_off=0):
    """Pure-JAX replica of the PyTorch Downsample.forward for validation."""
    N, C, H, W = x.shape
    pad_l = int(1.0 * (filt_size - 1) / 2) + pad_off
    pad_r = int(np.ceil(1.0 * (filt_size - 1) / 2)) + pad_off
    mode = {"reflect": "reflect", "refl": "reflect",
            "replicate": "edge", "repl": "edge", "zero": "constant"}[pad_type]
    if filt_size == 1:
        xp = x if pad_off == 0 else jnp.pad(
            x, ((0, 0), (0, 0), (pad_l, pad_r), (pad_l, pad_r)), mode=mode)
        return xp[:, :, ::stride, ::stride]
    xp = jnp.pad(x, ((0, 0), (0, 0), (pad_l, pad_r), (pad_l, pad_r)), mode=mode)
    a = _BINOMIAL[filt_size]
    f2 = np.outer(a, a)
    f2 = f2 / f2.sum()
    w = jnp.asarray(np.tile(f2[None, None], (C, 1, 1, 1)), x.dtype)  # (C,1,f,f)
    return jax.lax.conv_general_dilated(
        xp, w, window_strides=(stride, stride), padding="VALID",
        dimension_numbers=("NCHW", "OIHW", "NCHW"), feature_group_count=C)


if __name__ == "__main__":
    N, C, H, W = 2, 4, 16, 16
    key = jax.random.PRNGKey(0)
    x = jax.random.normal(key, (N, C, H, W), jnp.float32)

    out = downsample_forward(x)           # default config: reflect, filt 3, stride 2
    out = jax.block_until_ready(out)

    ref = _reference_forward(x)
    assert out.shape == (N, C, H // 2, W // 2), out.shape
    max_err = float(jnp.max(jnp.abs(out - ref)))
    assert jnp.allclose(out, ref, atol=1e-4, rtol=1e-4), f"mismatch, max_err={max_err}"

    print("KERNEL_OK")
</pallas_src>

<mosaic_0001>
module attributes {stable_mosaic.version = 11 : i64} {
  func.func @_blurpool_kernel(%arg0: i32, %arg1: memref<4x16x16xf32, #tpu.memory_space<vmem>>, %arg2: memref<16x8xf32, #tpu.memory_space<vmem>>, %arg3: memref<8x16xf32, #tpu.memory_space<vmem>>, %arg4: memref<4x8x8xf32, #tpu.memory_space<vmem>>) attributes {dimension_semantics = [#tpu.dimension_semantics<parallel>], iteration_bounds = array<i64: 2>, scalar_prefetch = 0 : i64, scratch_operands = 0 : i64, tpu.core_type = #tpu.core_type<tc>, window_params = [{transform_indices = @transform_0, window_bounds = array<i64: 4, 16, 16>}, {pipeline_mode = #tpu.pipeline_mode<synchronous>, transform_indices = @transform_1, window_bounds = array<i64: 16, 8>}, {pipeline_mode = #tpu.pipeline_mode<synchronous>, transform_indices = @transform_2, window_bounds = array<i64: 8, 16>}, {transform_indices = @transform_3, window_bounds = array<i64: 4, 8, 8>}]} {
    %c0 = arith.constant 0 : index
    %c0_0 = arith.constant 0 : index
    %c0_1 = arith.constant 0 : index
    %0 = vector.load %arg1[%c0, %c0_0, %c0_1] : memref<4x16x16xf32, #tpu.memory_space<vmem>>, vector<4x16x16xf32>
    %1 = vector.shape_cast %0 : vector<4x16x16xf32> to vector<64x16xf32>
    %c0_2 = arith.constant 0 : index
    %c0_3 = arith.constant 0 : index
    %2 = vector.load %arg2[%c0_2, %c0_3] : memref<16x8xf32, #tpu.memory_space<vmem>>, vector<16x8xf32>
    %cst = arith.constant dense<0.000000e+00> : vector<64x8xf32>
    %3 = tpu.matmul %1, %2, %cst {dimension_numbers = #tpu.dot_dimension_numbers<[1], [0], [0], [1], [0, 0, 1, 1], [], []>} : vector<64x16xf32>, vector<16x8xf32>, vector<64x8xf32> -> vector<64x8xf32>
    %4 = vector.shape_cast %3 : vector<64x8xf32> to vector<4x16x8xf32>
    %c0_4 = arith.constant 0 : index
    %c0_5 = arith.constant 0 : index
    %5 = vector.load %arg3[%c0_4, %c0_5] : memref<8x16xf32, #tpu.memory_space<vmem>>, vector<8x16xf32>
    %6 = vector.shape_cast %5 : vector<8x16xf32> to vector<1x8x16xf32>
    %7 = vector.broadcast %6 : vector<1x8x16xf32> to vector<4x8x16xf32>
    "tpu.trace_start"() <{level = 10 : i32, message = "bih,bhj->bij"}> : () -> ()
    %cst_6 = arith.constant dense<0.000000e+00> : vector<4x8x8xf32>
    %8 = tpu.matmul %7, %4, %cst_6 {dimension_numbers = #tpu.dot_dimension_numbers<[2], [1], [1], [2], [0, 0, 0, 1, 1, 2], [0], [0]>} : vector<4x8x16xf32>, vector<4x16x8xf32>, vector<4x8x8xf32> -> vector<4x8x8xf32>
    "tpu.trace_stop"() : () -> ()
    %c0_7 = arith.constant 0 : index
    %c0_8 = arith.constant 0 : index
    %c0_9 = arith.constant 0 : index
    %9 = vector.load %arg4[%c0_7, %c0_8, %c0_9] : memref<4x8x8xf32, #tpu.memory_space<vmem>>, vector<4x8x8xf32>
    tpu.vector_store %arg4[%c0_7, %c0_8, %c0_9], %8 {strides = array<i32>} : memref<4x8x8xf32, #tpu.memory_space<vmem>>, vector<4x8x8xf32>,
    return
  }
  func.func @transform_0(%arg0: i32) -> (i32, i32, i32) {
    %c0_i32 = arith.constant 0 : i32
    %c0_i32_0 = arith.constant 0 : i32
    %c0_i32_1 = arith.constant 0 : i32
    return %arg0, %c0_i32, %c0_i32_0 : i32, i32, i32
  }
  func.func @transform_1(%arg0: i32) -> (i32, i32) {
    %c0_i32 = arith.constant 0 : i32
    %c0_i32_0 = arith.constant 0 : i32
    %c0_i32_1 = arith.constant 0 : i32
    return %c0_i32, %c0_i32_0 : i32, i32
  }
  func.func @transform_2(%arg0: i32) -> (i32, i32) {
    %c0_i32 = arith.constant 0 : i32
    %c0_i32_0 = arith.constant 0 : i32
    %c0_i32_1 = arith.constant 0 : i32
    return %c0_i32, %c0_i32_0 : i32, i32
  }
  func.func @transform_3(%arg0: i32) -> (i32, i32, i32) {
    %c0_i32 = arith.constant 0 : i32
    %c0_i32_0 = arith.constant 0 : i32
    %c0_i32_1 = arith.constant 0 : i32
    return %arg0, %c0_i32, %c0_i32_0 : i32, i32, i32
  }
}

</mosaic_0001>

<bundles_post_ra>
// kernel: downsample_forward.1
= control target key start
LH: loop header
LB: loop body
LE: loop exit
PB: predicated region body
PF: predicated region fallthrough
CT: control target
= control target key end

     0   :  { %8 = vsyncpa [#allocation3], 0  ;;  %s1322_s0 = inlined_call_operand.hbm [shape: f32[8,16,16], index: 0, kind: input, shape index: {}]   ;;  %s1323_s1 = inlined_call_operand.hbm [shape: f32[16,8], index: 1, kind: input, shape index: {}]   ;;  %s1324_s2 = inlined_call_operand.hbm [shape: f32[8,16], index: 2, kind: input, shape index: {}]   ;;  %s1325_s3 = inlined_call_operand.hbm [shape: f32[8,8,8], index: 3, kind: output, shape index: {}]  }
   0x1   :  { %10 = vsyncpa [#allocation3 + $0x1], 0 }
   0x2   :  { %11 = vsyncpa [#allocation6], 0 }
   0x3   :  { %12 = vsyncpa [#allocation4], 0 }
   0x4   :  { %14 = vsyncpa [#allocation4 + $0x1], 0  ;;  %s1107_s12 = smov 0   ;;  %s1109_s13 = smov 0  }
   0x5   :  { %s1111_s14 = smov 0   ;;  %s1113_s15 = smov 0  }
   0x6 LB: > { %s1128_s16 = sadd.s32 4294967295, %s1075_s15   ;;  %s754_s17 = sadd.s32 4294967294, %s1075_s15   ;;  %s1075_s15 = sphi %s1113_s15, %s1346_s15   ;;  %s1071_s14 = sphi %s1111_s14, %s1345_s14   ;;  %s1067_s13 = sphi %s1109_s13, %s1344_s13   ;;  %s1063_s12 = sphi %s1107_s12, %s1343_s12  }
   0x7   : > { %p40_p0 = scmp.ne.s32.totalorder %s1067_s13, %s1063_s12  ;;  %p1326_p1 = scmp.eq.s32.totalorder %s1128_s16, 0 }
   0x8   : > { %p106_p2 = scmp.eq.s32.totalorder %s1128_s16, 1  ;;  %p112_p3 = scmp.eq.s32.totalorder %s754_s17, 1 }
   0x9   : > { %p1137_p4 = por %p1326_p1, %p40_p0  ;;  %p755_p5 = scmp.ge.s32.totalorder %s1075_s15, 1 }
   0xa   : > { %p1142_p6 = por %p112_p3, %p40_p0  ;;  %p119_p7 = scmp.lt.s32.totalorder %s1075_s15, 3 }
   0xb   : > { %s1330_s18 = scalar_select %p1137_p4, 1, 0 }
   0xc   : > { %s1331_s19 = scalar_select %p1142_p6, 1, 0 }
   0xd   : > { %p1147_p8 = pnand %p755_p5, %p119_p7  ;;  %s1077_s21 = smov [#allocation5]  }
   0xe   : > { %s131_s22 = sshll.u32 %s1077_s21, 4  ;;  %s1078_s24 = smov [#allocation7]   ;;  %s132_s22 = int_to_ptr.vmem [resolvable:$true] %s131_s22 }
   0xf   : > { %s1332_s20 = scalar_select %p1147_p8, 1, 0 }
  0x10   : > { %p866_p9 = pneg %p1147_p8  ;;  %s145_s25 = sshll.u32 %s1078_s24, 4  ;;  %s146_s25 = int_to_ptr.vmem [resolvable:$true] %s145_s25 }
  0x11   : > { %s938_s26 = scalar_lea.vmem %s132_s22, 256  ;;  %p946_p5 = scmp.lt.s32.totalorder %s132_s22, %s132_s22 }
  0x12   : > { %p1156_p11 = pnand %p866_p9, %p1326_p1  ;;  %p939_p13 = scmp.ne.s32.totalorder %s132_s22, %s938_s26 }
  0x13   : > { %p947_p7 = scmp.lt.s32.totalorder %s938_s26, %s938_s26 }
  0x14   : > { %p929_p12 = pneg %p1156_p11 }
  0x15   : > { %p948_p10 = por %p947_p7, %p946_p5 }
  0x16   : > { %p941_p0 = pnand %p939_p13, %p929_p12 }
  0x18   : > { %p942_p3 = pneg %p941_p0 }
  0x1a   : > { %p949_p9 = pnand %p948_p10, %p942_p3 }
  0x1c   : > { %952 = shalt.err (!%p949_p9)
}
  0x1d   : > { %s1079_s27 = smov 128   ;;  %s1080_s28 = smov 8  }
  0x1e   : > { %869 = dma.hbm_to_vmem [thread:$0]  (!%p1156_p11), %s1323_s1, 256, %s132_s22, [#allocation6], %s1079_s27, %s1079_s27, %s1080_s28  }
  0x1f   : > { %s964_s4 = scalar_lea.vmem %s146_s25, 128  ;;  %p972_p10 = scmp.lt.s32.totalorder %s146_s25, %s146_s25 }
  0x20   : > { %p965_p13 = scmp.ne.s32.totalorder %s146_s25, %s964_s4  ;;  %p973_p3 = scmp.lt.s32.totalorder %s964_s4, %s964_s4 }
  0x22   : > { %p967_p0 = pnand %p965_p13, %p929_p12  ;;  %p974_p7 = por %p973_p3, %p972_p10 }
  0x24   : > { %p968_p5 = pneg %p967_p0 }
  0x26   : > { %p975_p9 = pnand %p974_p7, %p968_p5 }
  0x28   : > { %978 = shalt.err (!%p975_p9)
}
  0x29   : > { %872 = dma.hbm_to_vmem [thread:$0]  (!%p1156_p11), %s1324_s2, 128, %s146_s25, [#allocation6]  }
  0x2a   : > { %s1182_s7 = sadd.s32 1, %s1075_s15   ;;  %s27_s8 = sadd.s32 1, %s1071_s14 }
  0x2b   : > { %s24_s9 = ssub.s32 %s1075_s15, %s1182_s7  ;;  %p34_p12 = scmp.ne.s32.totalorder %s1071_s14, %s1067_s13 }
  0x2c   : > { %p25_p13 = scmp.eq.s32.totalorder %s24_s9, 0  ;;  %p35_p0 = scmp.eq.s32.totalorder %s1075_s15, 0 }
  0x2d   : > { %p1192_p5 = por %p106_p2, %p34_p12  ;;  %p883_p10 = scmp.lt.s32.totalorder %s1075_s15, 2 }
  0x2e   : > { %s1198_s11 = scalar_select %p25_p13, %s1071_s14, %s27_s8  }
  0x2f   : > { %s1334_s10 = scalar_select %p1192_p5, 1, 0 }
  0x30   : > { %p36_p3 = por %p35_p0, %p34_p12  ;;  %s156_s17 = sand.u32 1, %s1071_s14  }
  0x31   : > { %s759_s21 = sshll.u32 %s156_s17, 6  ;;  %s786_s22 = sshll.u32 %s1075_s15, 10 }
  0x32   : > { %s1205_s25 = scalar_lea.hbm %s1322_s0, %s786_s22  ;;  %s160_s26 = scalar_lea.vmem [#allocation2], %s759_s21 }
  0x33   : > { %s168_s29 = sshll.u32 %s160_s26, 4  ;;  %p1209_p2 = pnand %p883_p10, %p36_p3  ;;  %s1207_s29 = int_to_ptr.vmem [resolvable:$true] %s168_s29 }
  0x34   : > { %s1213_s4 = scalar_lea.sflag [#allocation3], %s156_s17  ;;  %s979_s5 = scalar_lea.hbm %s1205_s25, 1024 }
  0x35   : > { %p980_p11 = scmp.ne.s32.totalorder %s1205_s25, %s979_s5  ;;  %p981_p7 = pneg %p1209_p2 }
  0x36   : > { %s984_s9 = scalar_lea.hbm %s1322_s0, 2048  ;;  %p985_p13 = scmp.lt.s32.totalorder %s1205_s25, %s1322_s0 }
  0x37   : > { %p982_p9 = pnand %p981_p7, %p980_p11  ;;  %p986_p0 = scmp.lt.s32.totalorder %s984_s9, %s979_s5 }
  0x39   : > { %p983_p12 = pneg %p982_p9  ;;  %p987_p10 = por %p986_p0, %p985_p13 }
  0x3b   : > { %p988_p3 = pnand %p987_p10, %p983_p12 }
  0x3d   : > { %991 = shalt.err (!%p988_p3)
}
  0x3e   : > { %s992_s17 = scalar_lea.vmem %s1207_s29, 1024  ;;  %s1081_s23 = smov [#allocation2]  }
  0x3f   : > { %p993_p1 = scmp.ne.s32.totalorder %s1207_s29, %s992_s17  ;;  %s997_s24 = sshll.u32 %s1081_s23, 4  ;;  %s998_s24 = int_to_ptr.vmem [resolvable:$false] %s997_s24 }
  0x40   : > { %s999_s26 = scalar_lea.vmem %s998_s24, 2048  ;;  %p1000_p9 = scmp.lt.s32.totalorder %s1207_s29, %s998_s24 }
  0x41   : > { %p995_p6 = pnand %p993_p1, %p981_p7  ;;  %p1001_p5 = scmp.lt.s32.totalorder %s999_s26, %s992_s17 }
  0x43   : > { %p996_p11 = pneg %p995_p6  ;;  %p1002_p4 = por %p1001_p5, %p1000_p9 }
  0x45   : > { %p1003_p8 = pnand %p1002_p4, %p996_p11 }
  0x47   : > { %1006 = shalt.err (!%p1003_p8)
}
  0x48   : > { %876 = dma.hbm_to_vmem [thread:$0]  (!%p1209_p2), %s1205_s25, 1024, %s1207_s29, %s1213_s4, %s1079_s27, %s1079_s27, %s1080_s28  }
  0x49   : > { %p1336_p1 = scmp.ne.s32.totalorder %s1332_s20, 0 }
  0x4a   : > { %s1240_s5 = sand.u32 (!%p1336_p1), 1, %s1067_s13   ;;  %p1337_p4 = scmp.ne.s32.totalorder (!%p1336_p1), %s1330_s18, 0 }
  0x4b   : > { %180 = sbr.rel (%p1336_p1) target bundleno = 505 (0x1f9), region = 32  ;;  %s764_s6 = sshll.u32 (!%p1336_p1), %s1240_s5, 6 }
  0x4c   : > { %s183_s8 = scalar_lea.sflag (!%p1336_p1), [#allocation3], %s1240_s5  ;;  %s186_s9 = scalar_lea.vmem (!%p1336_p1), [#allocation2], %s764_s6 }
  0x50   : > { %1050 = dma.done.wait (%p1337_p4), %s183_s8, 1024  }
  0x51   : > { %1052 = vsyncadd (%p1337_p4), %s183_s8, 4294966272  ;;  %p1338_p6 = scmp.eq.s32.totalorder %s1128_s16, 0 }
  0x53   : > { %1054 = dma.done.wait (%p1338_p6), [#allocation6], 384   ;;  %p1339_p8 = pmov %p1338_p6 }
  0x54   : > { %vm229_vm0 = vcmask 130048   ;;  %v228_v0 = vld [vmem:[#allocation5 + $0x8] sm:$0xff]  ;;  %v227_v1 = vld [vmem:[#allocation5] sm:$0xff]  ;;  %v221_v4 = vld [vmem:[%s186_s9 + $0x10] sm:$0xff]  ;;  %v1082_v10 = vmov 0.0   ;;  %vm1083_vm1 = vmmov 0  }
  0x55   : > { %1056 = vsyncadd (%p1339_p8), [#allocation6], 4294966912  ;;  %v219_v2 = vld [vmem:[%s186_s9] sm:$0xff]  ;;  %810 = vmatprep.subr.mxu0 %v228_v0  ;;  %v220_v3 = vld [vmem:[%s186_s9 + $0x8] sm:$0xff]  ;;  %826 = vmatprep.subr.mxu1 %v1082_v10  ;;  %s767_s18 = sshll.u32 %s1240_s5, 5  ;;  %vm643_vm2 = vcmask 64512  }
  0x56   : > { %814 = vmatprep.mubr.msk.f32.mxu0 %vm229_vm0, %v219_v2  ;;  %811 = vmatpush3.msra.mxu0 %v228_v0  ;;  %v222_v5 = vld [vmem:[%s186_s9 + $0x18] sm:$0xff]  ;;  %v223_v6 = vld [vmem:[%s186_s9 + $0x20] sm:$0xff]  ;;  %v224_v7 = vld [vmem:[%s186_s9 + $0x28] sm:$0xff]  ;;  %s216_s20 = scalar_lea.vmem [#allocation8], %s767_s18  ;;  %s787_s28 = sshll.u32 %s1128_s16, 9 }
  0x57   : > { %812 = vmatprep.subr.mxu0 %v227_v1  ;;  %v225_v8 = vld [vmem:[%s186_s9 + $0x30] sm:$0xff]  ;;  %v226_v9 = vld [vmem:[%s186_s9 + $0x38] sm:$0xff]  ;;  %830 = vmatprep.mubr.msk.f32.mxu1 %vm1083_vm1, %v1082_v10  ;;  %s662_s27 = sshll.u32 %s216_s20, 4  ;;  %s1278_s30 = scalar_lea.hbm %s1325_s3, %s787_s28  ;;  %s1272_s27 = int_to_ptr.vmem [resolvable:$true] %s662_s27 }
  0x58   : > { %813 = vmatpush3.msra.mxu0 %v227_v1  ;;  %v359_v12 = vld [vmem:[#allocation7] sm:$0xff]  ;;  %s649_s4 = scalar_lea.sflag [#allocation4], %s1240_s5  ;;  %s1007_s16 = scalar_lea.vmem %s1272_s27, 512 }
  0x59   : > { %815 = vmatmul.mubr.msk.f32.vlgmr.msra.gmra.mxu0 %vm229_vm0, %v220_v3  ;;  %p1008_p5 = scmp.ne.s32.totalorder %s1272_s27, %s1007_s16  ;;  %p1340_p2 = scmp.ne.s32.totalorder %s1334_s10, 0 }
  0x5a   : > { %817 = vmatprep.mubr.msk.f32.mxu0 %vm229_vm0, %v221_v4  ;;  %s1084_s21 = smov [#allocation8]  }
  0x5b   : > { %p1009_p7 = pnand %p1008_p5, %p1340_p2  ;;  %s1011_s22 = sshll.u32 %s1084_s21, 4  ;;  %s1012_s22 = int_to_ptr.vmem [resolvable:$false] %s1011_s22 }
  0x5c   : > { %s1013_s17 = scalar_lea.vmem %s1012_s22, 1024  ;;  %p1014_p13 = scmp.lt.s32.totalorder %s1272_s27, %s1012_s22 }
  0x5d   : > { %818 = vmatmul.mubr.msk.f32.gmra.mxu0 %vm229_vm0, %v222_v5  ;;  %p1010_p12 = pneg %p1009_p7  ;;  %p1015_p0 = scmp.lt.s32.totalorder %s1013_s17, %s1007_s16 }
  0x5e   : > { %820 = vmatprep.mubr.msk.f32.mxu0 %vm229_vm0, %v223_v6 }
  0x5f   : > { %p1016_p10 = por %p1015_p0, %p1014_p13 }
  0x61   : > { %821 = vmatmul.mubr.msk.f32.gmra.mxu0 %vm229_vm0, %v224_v7  ;;  %p1017_p3 = pnand %p1016_p10, %p1010_p12 }
  0x62   : > { %823 = vmatprep.mubr.msk.f32.mxu0 %vm229_vm0, %v225_v8 }
  0x65   : > { %824 = vmatmul.mubr.msk.f32.gmra.mxu0 %vm229_vm0, %v226_v9 }
 0x119   : > { %v816_v11 = vpop.f32.mrf.mxu0 }
 0x11a   : > { %827 = vmatpush3.msra.mxu1 %v816_v11 }
 0x11b   : > { %v320_v13 = vpop.f32.mrf.mxu0  ;;  %828 = vmatprep.subr.mxu1 %v1082_v10 }
 0x11c   : > { %829 = vmatpush3.msra.mxu1 %v320_v13 }
 0x11d   : > { %v819_v14 = vpop.f32.mrf.mxu0  ;;  %831 = vmatmul.mubr.msk.f32.vlgmr.msra.gmra.mxu1 %vm229_vm0, %v359_v12  ;;  %833 = vmatprep.subr.mxu1 %v1082_v10 }
 0x11e   : > { %834 = vmatpush3.msra.mxu1 %v819_v14  ;;  %837 = vmatprep.mubr.msk.f32.mxu1 %vm1083_vm1, %v1082_v10 }
 0x11f   : > { %v330_v15 = vpop.f32.mrf.mxu0  ;;  %835 = vmatprep.subr.mxu1 %v1082_v10 }
 0x120   : > { %836 = vmatpush3.msra.mxu1 %v330_v15 }
 0x121   : > { %v822_v16 = vpop.f32.mrf.mxu0  ;;  %838 = vmatmul.mubr.msk.f32.vlgmr.msra.gmra.mxu1 %vm229_vm0, %v359_v12  ;;  %840 = vmatprep.subr.mxu1 %v1082_v10 }
 0x122   : > { %841 = vmatpush3.msra.mxu1 %v822_v16  ;;  %844 = vmatprep.mubr.msk.f32.mxu1 %vm1083_vm1, %v1082_v10 }
 0x123   : > { %v340_v17 = vpop.f32.mrf.mxu0  ;;  %842 = vmatprep.subr.mxu1 %v1082_v10 }
 0x124   : > { %843 = vmatpush3.msra.mxu1 %v340_v17 }
 0x125   : > { %v825_v18 = vpop.f32.mrf.mxu0  ;;  %845 = vmatmul.mubr.msk.f32.vlgmr.msra.gmra.mxu1 %vm229_vm0, %v359_v12  ;;  %847 = vmatprep.subr.mxu1 %v1082_v10 }
 0x126   : > { %848 = vmatpush3.msra.mxu1 %v825_v18  ;;  %851 = vmatprep.mubr.msk.f32.mxu1 %vm1083_vm1, %v1082_v10 }
 0x127   : > { %v350_v19 = vpop.f32.mrf.mxu0  ;;  %849 = vmatprep.subr.mxu1 %v1082_v10 }
 0x128   : > { %850 = vmatpush3.msra.mxu1 %v350_v19 }
 0x129   : > { %852 = vmatmul.mubr.msk.f32.vlgmr.msra.gmra.mxu1 %vm229_vm0, %v359_v12 }
 0x1dd   : > { %v429_v20 = vpop.f32.mrf.mxu1 }
 0x1de   : > { %644 = vst.msk [vmem:[%s216_s20] sm:$0xff] %vm643_vm2, %v429_v20 }
 0x1df   : > { %v832_v21 = vpop.f32.mrf.mxu1 }
 0x1e1   : > { %v499_v22 = vpop.f32.mrf.mxu1 }
 0x1e2   : > { %645 = vst.msk [vmem:[%s216_s20 + $0x8] sm:$0xff] %vm643_vm2, %v499_v22 }
 0x1e3   : > { %v839_v23 = vpop.f32.mrf.mxu1 }
 0x1e5   : > { %v569_v24 = vpop.f32.mrf.mxu1 }
 0x1e6   : > { %646 = vst.msk [vmem:[%s216_s20 + $0x10] sm:$0xff] %vm643_vm2, %v569_v24 }
 0x1e7   : > { %v846_v25 = vpop.f32.mrf.mxu1 }
 0x1e9   : > { %v639_v26 = vpop.f32.mrf.mxu1 }
 0x1ea   : > { %647 = vst.msk [vmem:[%s216_s20 + $0x18] sm:$0xff] %vm643_vm2, %v639_v26 }
 0x1eb   : > { %v853_v27 = vpop.f32.mrf.mxu1 }
 0x1ec   : > { %1020 = shalt.err (!%p1017_p3)
}
 0x1ed   : > { %s1021_s23 = scalar_lea.hbm %s1278_s30, 512  ;;  %s1025_s6 = scalar_lea.hbm %s1325_s3, 1024 }
 0x1ee   : > { %p1022_p11 = scmp.ne.s32.totalorder %s1278_s30, %s1021_s23  ;;  %p1026_p4 = scmp.lt.s32.totalorder %s1278_s30, %s1325_s3 }
 0x1ef   : > { %p1027_p6 = scmp.lt.s32.totalorder %s1025_s6, %s1021_s23 }
 0x1f0   : > { %p1023_p9 = pnand %p1022_p11, %p1340_p2 }
 0x1f1   : > { %p1028_p8 = por %p1027_p6, %p1026_p4 }
 0x1f2   : > { %p1024_p1 = pneg %p1023_p9 }
 0x1f4   : > { %p1029_p5 = pnand %p1028_p8, %p1024_p1 }
 0x1f6   : > { %1032 = shalt.err (!%p1029_p5)
}
 0x1f7   : > { %s1085_s18 = smov 128   ;;  %s1086_s20 = smov 8  }
 0x1f8   : > { %864 = dma.vmem_to_hbm [thread:$0]  (%p1340_p2), %s1272_s27, 512, %s1278_s30, %s649_s4, %s1085_s18, %s1085_s18, %s1086_s20  }
 0x1f9 PF: > { %s677_s28 = sand.u32 1, %s1063_s12   ;;  %p1341_p7 = scmp.ne.s32.totalorder %s1331_s19, 0 }
 0x1fa   : > { %p1342_p12 = scmp.ge.s32.totalorder %s1075_s15, 2  ;;  %s678_s25 = scalar_lea.sflag [#allocation4], %s677_s28 }
 0x1fc   : > { %p878_p13 = pnand %p1342_p12, %p1341_p7 }
 0x1fe   : > { %p879_p0 = pneg %p878_p13 }
 0x200   : > { %1058 = dma.done.wait (%p879_p0), %s678_s25, 512  }
 0x201   : > { %1060 = vsyncadd (%p879_p0), %s678_s25, 4294966784  ;;  %p17_p10 = scmp.ge.s32.totalorder %s1182_s7, 4   ;;  %s1343_s12 = smov %s1067_s13 }
 0x202   : > { %s1344_s13 = smov %s1071_s14  ;;  %s1345_s14 = smov %s1198_s11 }
 0x203   : > { %s1346_s15 = smov %s1182_s7  ;;  %19 = sbr.rel (!%p17_p10) target bundleno = 6 (0x6), region = 85 }
 0x208   :  { %683 = vsyncpa [#allocation3], 1 }
 0x209   :  { %685 = vsyncpa [#allocation3 + $0x1], 1 }
 0x20a   :  { %686 = vsyncpa [#allocation6], 1 }
 0x20b   :  { %687 = vsyncpa [#allocation4], 1 }
 0x20c   :  { %689 = vsyncpa [#allocation4 + $0x1], 1 }

</bundles_post_ra>
